<compile_context>
chip_gen: v7x
topology: tpu7x:2x2x1
jax: 0.10.0
libtpu: 0.0.40
codegen_flags: <defaults>
</compile_context>

<pallas_src>
import math

import jax
import jax.numpy as jnp
from jax.experimental import pallas as pl
from jax.experimental.pallas import tpu as pltpu

_MAX_LANES = 2048


def _snake_kernel(x_ref, alpha_ref, inv_alpha_ref, o_ref):
    # x_ref:         (tr, L) tile of the flattened input (any float dtype)
    # alpha_ref:     (1, L)  per-lane alpha (alpha tiled L//F times), f32, resident
    # inv_alpha_ref: (1, L)  precomputed 1/alpha, f32, resident
    # o_ref:         (tr, L)
    x = x_ref[...].astype(jnp.float32)
    s = jnp.sin(alpha_ref[...] * x)                    # (1, L) broadcasts over rows
    o_ref[...] = (x + s * s * inv_alpha_ref[...]).astype(o_ref.dtype)


def _round_up(n: int, m: int) -> int:
    return ((n + m - 1) // m) * m


def snake_activation(x: jax.Array, alpha: jax.Array, *, tile_bytes: int = 4 << 20) -> jax.Array:
    """Apply Snake activation elementwise; alpha has shape (x.shape[-1],)."""
    orig_shape = x.shape
    feat = orig_shape[-1]
    assert alpha.shape == (feat,)
    total = int(x.size)
    itemsize = x.dtype.itemsize

    # Lane-dense slab: L is a multiple of lcm(feat, 128); grow it (no padding)
    # while the total divides cleanly, otherwise pad the tail (< L elements).
    base = (feat * 128) // math.gcd(feat, 128)         # lcm(feat, 128)
    L = base
    while L * 2 <= _MAX_LANES and total % (L * 2) == 0:
        L *= 2
    total_padded = _round_up(total, L)

    x_flat = x.reshape(-1)
    if total_padded != total:
        # Zero padding is safe: padded lanes give 0 + sin(0)^2/alpha and are
        # sliced off below (any NaN there for alpha==0 is discarded).
        x_flat = jnp.pad(x_flat, (0, total_padded - total))
    x2 = x_flat.reshape(-1, L)
    rows = x2.shape[0]

    # alpha repeats with period feat along the flattened axis and L % feat == 0,
    # so column c of the (rows, L) view corresponds to feature c % feat.
    alpha_f32 = alpha.astype(jnp.float32)
    alpha2 = jnp.tile(alpha_f32, L // feat).reshape(1, L)
    inv_alpha2 = jnp.tile(1.0 / alpha_f32, L // feat).reshape(1, L)

    # Row-tile sizing: ~tile_bytes per input tile, clamped so the total VMEM
    # footprint (4x I/O tiles + ~2x f32 working tile) stays under ~44 MiB, and
    # capped so the grid keeps >= ~4 steps for v7x dual-TC sharding.
    max_tile_elems = (44 << 20) // (4 * itemsize + 8)
    target_rows = max(8, min(tile_bytes // (L * itemsize), max_tile_elems // L) // 8 * 8)
    quarter_rows = max(8, _round_up(pl.cdiv(rows, 4), 8))
    tr = min(rows, target_rows, quarter_rows)
    grid = (pl.cdiv(rows, tr),)

    # Explicit VMEM budget: in + out double-buffered + f32 intermediates + alpha rows.
    tile_in = tr * L * itemsize
    vmem_need = 4 * tile_in + 2 * tr * L * 4 + 4 * L * 4
    vmem_limit = int(min(max(vmem_need * 5 // 4, 32 << 20), 48 << 20))

    cost = pl.CostEstimate(
        flops=5 * total,
        transcendentals=total,
        bytes_accessed=2 * total * itemsize + 2 * L * 4,
    )

    out2 = pl.pallas_call(
        _snake_kernel,
        out_shape=jax.ShapeDtypeStruct(x2.shape, x.dtype),
        grid_spec=pltpu.PrefetchScalarGridSpec(
            num_scalar_prefetch=0,
            grid=grid,
            in_specs=[
                pl.BlockSpec((tr, L), lambda i: (i, 0)),   # x row tile
                pl.BlockSpec((1, L), lambda i: (0, 0)),    # alpha (resident)
                pl.BlockSpec((1, L), lambda i: (0, 0)),    # 1/alpha (resident)
            ],
            out_specs=pl.BlockSpec((tr, L), lambda i: (i, 0)),
        ),
        compiler_params=pltpu.CompilerParams(
            dimension_semantics=("parallel",),
            vmem_limit_bytes=vmem_limit,
        ),
        cost_estimate=cost,
    )(x2, alpha2, inv_alpha2)

    out_flat = out2.reshape(-1)
    if total_padded != total:
        out_flat = out_flat[:total]
    return out_flat.reshape(orig_shape)


def snake_reference(x, alpha):
    xf = x.astype(jnp.float32)
    af = alpha.astype(jnp.float32)
    return (xf + (1.0 / af) * jnp.sin(af * xf) ** 2).astype(x.dtype)


if __name__ == "__main__":
    key = jax.random.PRNGKey(0)
    k1, k2, k3, k4 = jax.random.split(key, 4)

    # Primary small test matching the module layout (x: [..., in_features]).
    B, S, F = 2, 8, 32
    x = jax.random.normal(k1, (B, S, F), dtype=jnp.float32)
    alpha = jnp.ones((F,), dtype=jnp.float32)           # nn.Parameter(torch.ones(F) * 1.0)
    alpha = alpha * jnp.exp(0.1 * jax.random.normal(k2, (F,)))  # perturb to exercise broadcast

    out = jax.block_until_ready(snake_activation(x, alpha))
    ref = snake_reference(x, alpha)
    assert out.shape == x.shape and out.dtype == x.dtype
    assert jnp.allclose(out, ref, atol=1e-5, rtol=1e-5)

    # Multiple grid steps + padded edge block (rows=60, tr=8, L=2048).
    x_b = jax.random.normal(k3, (40, 96, F), dtype=jnp.float32)
    out_b = jax.block_until_ready(snake_activation(x_b, alpha, tile_bytes=1 << 14))
    assert jnp.allclose(out_b, snake_reference(x_b, alpha), atol=1e-5, rtol=1e-5)

    # Awkward feature width -> pad+slice lane-dense path (L=640, padded tail).
    F2 = 160
    x_c = jax.random.normal(k3, (3, 7, F2), dtype=jnp.float32)
    alpha_c = jnp.ones((F2,), dtype=jnp.float32)
    out_c = jax.block_until_ready(snake_activation(x_c, alpha_c))
    assert jnp.allclose(out_c, snake_reference(x_c, alpha_c), atol=1e-5, rtol=1e-5)

    # bf16 I/O (f32 compute inside the kernel).
    x_d = jax.random.normal(k4, (4, 16, F), dtype=jnp.float32).astype(jnp.bfloat16)
    out_d = jax.block_until_ready(snake_activation(x_d, alpha))
    ref_d = snake_reference(x_d, alpha)
    assert out_d.dtype == jnp.bfloat16
    assert jnp.allclose(out_d.astype(jnp.float32), ref_d.astype(jnp.float32), atol=1e-2, rtol=1e-2)

    print("KERNEL_OK")
</pallas_src>

<mosaic_0001>
module attributes {stable_mosaic.version = 11 : i64} {
  func.func @_snake_kernel(%arg0: i32, %arg1: memref<1x512xf32, #tpu.memory_space<vmem>>, %arg2: memref<1x512xf32, #tpu.memory_space<vmem>>, %arg3: memref<1x512xf32, #tpu.memory_space<vmem>>, %arg4: memref<1x512xf32, #tpu.memory_space<vmem>>) attributes {dimension_semantics = [#tpu.dimension_semantics<parallel>], iteration_bounds = array<i64: 1>, scalar_prefetch = 0 : i64, scratch_operands = 0 : i64, tpu.core_type = #tpu.core_type<tc>, window_params = [{transform_indices = @transform_0, window_bounds = array<i64: 1, 512>}, {pipeline_mode = #tpu.pipeline_mode<synchronous>, transform_indices = @transform_1, window_bounds = array<i64: 1, 512>}, {pipeline_mode = #tpu.pipeline_mode<synchronous>, transform_indices = @transform_2, window_bounds = array<i64: 1, 512>}, {transform_indices = @transform_3, window_bounds = array<i64: 1, 512>}]} {
    %c0 = arith.constant 0 : index
    %c0_0 = arith.constant 0 : index
    %0 = vector.load %arg1[%c0, %c0_0] : memref<1x512xf32, #tpu.memory_space<vmem>>, vector<1x512xf32>
    %c0_1 = arith.constant 0 : index
    %c0_2 = arith.constant 0 : index
    %1 = vector.load %arg2[%c0_1, %c0_2] : memref<1x512xf32, #tpu.memory_space<vmem>>, vector<1x512xf32>
    %2 = arith.mulf %1, %0 : vector<1x512xf32>
    %3 = math.sin %2 : vector<1x512xf32>
    %4 = arith.mulf %3, %3 : vector<1x512xf32>
    %c0_3 = arith.constant 0 : index
    %c0_4 = arith.constant 0 : index
    %5 = vector.load %arg3[%c0_3, %c0_4] : memref<1x512xf32, #tpu.memory_space<vmem>>, vector<1x512xf32>
    %6 = arith.mulf %4, %5 : vector<1x512xf32>
    %7 = arith.addf %0, %6 : vector<1x512xf32>
    %c0_5 = arith.constant 0 : index
    %c0_6 = arith.constant 0 : index
    %8 = vector.load %arg4[%c0_5, %c0_6] : memref<1x512xf32, #tpu.memory_space<vmem>>, vector<1x512xf32>
    tpu.vector_store %arg4[%c0_5, %c0_6], %7 {strides = array<i32>} : memref<1x512xf32, #tpu.memory_space<vmem>>, vector<1x512xf32>,
    return
  }
  func.func @transform_0(%arg0: i32) -> (i32, i32) {
    %c0_i32 = arith.constant 0 : i32
    %c0_i32_0 = arith.constant 0 : i32
    return %arg0, %c0_i32 : i32, i32
  }
  func.func @transform_1(%arg0: i32) -> (i32, i32) {
    %c0_i32 = arith.constant 0 : i32
    %c0_i32_0 = arith.constant 0 : i32
    %c0_i32_1 = arith.constant 0 : i32
    return %c0_i32, %c0_i32_0 : i32, i32
  }
  func.func @transform_2(%arg0: i32) -> (i32, i32) {
    %c0_i32 = arith.constant 0 : i32
    %c0_i32_0 = arith.constant 0 : i32
    %c0_i32_1 = arith.constant 0 : i32
    return %c0_i32, %c0_i32_0 : i32, i32
  }
  func.func @transform_3(%arg0: i32) -> (i32, i32) {
    %c0_i32 = arith.constant 0 : i32
    %c0_i32_0 = arith.constant 0 : i32
    return %arg0, %c0_i32 : i32, i32
  }
}

</mosaic_0001>

<bundles_post_ra>
// kernel: tpu_custom_call.1
= control target key start
LH: loop header
LB: loop body
LE: loop exit
PB: predicated region body
PF: predicated region fallthrough
CT: control target
= control target key end

     0   :  { %8 = vsyncpa [#allocation3], 0  ;;  %s357_s0 = inlined_call_operand.hbm [shape: f32[1,512], index: 0, kind: input, shape index: {}]   ;;  %s358_s1 = inlined_call_operand.hbm [shape: f32[1,512], index: 1, kind: input, shape index: {}]   ;;  %s359_s2 = inlined_call_operand.vmem [shape: f32[1,512], index: 2, kind: input, shape index: {}]   ;;  %s360_s3 = inlined_call_operand.hbm [shape: f32[1,512], index: 3, kind: output, shape index: {}]  }
   0x1   :  { %9 = vsyncpa [#allocation6], 0 }
   0x2   :  { %10 = vsyncpa [#allocation4], 0  ;;  %s264_s12 = smov [#allocation2]   ;;  %s265_s14 = smov [#allocation5]  }
   0x3   :  { %s17_s13 = sshll.u32 %s264_s12, 4  ;;  %s27_s15 = sshll.u32 %s265_s14, 4  ;;  %s18_s13 = int_to_ptr.vmem [resolvable:$true] %s17_s13  ;;  %s28_s15 = int_to_ptr.vmem [resolvable:$true] %s27_s15 }
   0x4   :  { %s192_s18 = scalar_lea.hbm %s357_s0, 64 }
   0x5   :  { %p193_p0 = scmp.ne.s32.totalorder %s357_s0, %s192_s18  ;;  %p196_p1 = scmp.lt.u32.totalorder %s192_s18, %s357_s0 }
   0x7   :  { %p198_p2 = pnand %p196_p1, %p193_p0 }
   0x9   :  { %201 = shalt.err (!%p198_p2)
}
   0xa   :  { %s202_s23 = scalar_lea.vmem %s18_s13, 64  ;;  %p207_p4 = scmp.lt.s32.totalorder %s18_s13, %s18_s13 }
   0xb   :  { %p203_p3 = scmp.ne.s32.totalorder %s18_s13, %s202_s23  ;;  %p208_p5 = scmp.lt.s32.totalorder %s202_s23, %s202_s23 }
   0xd   :  { %p209_p6 = por %p208_p5, %p207_p4 }
   0xf   :  { %p210_p7 = pnand %p209_p6, %p203_p3 }
  0x11   :  { %213 = shalt.err (!%p210_p7)
}
  0x12   :  { %20 = dma.hbm_to_vmem [thread:$0]  %s357_s0, 64, %s18_s13, [#allocation3]  }
  0x13   :  { %s214_s28 = scalar_lea.hbm %s358_s1, 64 }
  0x14   :  { %p215_p8 = scmp.ne.s32.totalorder %s358_s1, %s214_s28  ;;  %p218_p9 = scmp.lt.u32.totalorder %s214_s28, %s358_s1 }
  0x16   :  { %p220_p10 = pnand %p218_p9, %p215_p8 }
  0x18   :  { %223 = shalt.err (!%p220_p10)
}
  0x19   :  { %s224_s6 = scalar_lea.vmem %s28_s15, 64  ;;  %p229_p12 = scmp.lt.s32.totalorder %s28_s15, %s28_s15 }
  0x1a   :  { %p225_p11 = scmp.ne.s32.totalorder %s28_s15, %s224_s6  ;;  %p230_p13 = scmp.lt.s32.totalorder %s224_s6, %s224_s6 }
  0x1c   :  { %p231_p0 = por %p230_p13, %p229_p12 }
  0x1e   :  { %p232_p1 = pnand %p231_p0, %p225_p11 }
  0x20   :  { %235 = shalt.err (!%p232_p1)
}
  0x21   :  { %30 = dma.hbm_to_vmem [thread:$0]  %s358_s1, 64, %s28_s15, [#allocation6]  }
  0x22   :  { %258 = dma.done.wait [#allocation3], 64  }
  0x23   :  { %259 = vsyncadd [#allocation3], 4294967232 }
  0x24   :  { %260 = dma.done.wait [#allocation6], 64  }
  0x25   :  { %261 = vsyncadd [#allocation6], 4294967232  ;;  %v317_v0 = vld [vmem:[#allocation2] sm:$0xf]  ;;  %v40_v1 = vld [vmem:[#allocation5] sm:$0xf] }
  0x26   :  { %v320_v2 = vmul.f32 %v40_v1, %v317_v0  ;;  %v266_v14 = vmov 683565275   ;;  %v267_v16 = vmov 2475754826   ;;  %v268_v18 = vmov 2131351028  }
  0x27   :  { %v269_v20 = vmov 2102212464   ;;  %v270_v22 = vmov 920167782   ;;  %v271_v29 = vmov 1326507024  }
  0x28   :  { %v45_v3 = vand.u32 2139095040, %v320_v2  ;;  %v42_v5 = vand.u32 2147483647, %v320_v2  ;;  %vm44_vm7 = vcmp.lt.s32.totalorder %v320_v2, 0  ;;  %vm134_vm12 = vweird.f32 %v320_v2  ;;  %s272_s9 = smov [#allocation7]  }
  0x29   :  { %s161_s10 = sshll.u32 %s272_s9, 4  ;;  %s162_s10 = int_to_ptr.vmem [resolvable:$true] %s161_s10 }
  0x2a   :  { %v46_v4 = vshrl.u32 %v45_v3, 23  ;;  %v49_v8 = vand.u32 8388607, %v42_v5  ;;  %vm43_vm8 = vcmp.le.f32.partialorder %v42_v5, 0.7853982  ;;  %s236_s11 = scalar_lea.vmem %s162_s10, 64  ;;  %p241_p3 = scmp.lt.s32.totalorder %s162_s10, %s162_s10 }
  0x2b   :  { %p237_p2 = scmp.ne.s32.totalorder %s162_s10, %s236_s11  ;;  %p242_p4 = scmp.lt.s32.totalorder %s236_s11, %s236_s11 }
  0x2c   :  { %v171_v6 = vadd.s32 4294967169, %v46_v4  ;;  %v50_v11 = vor.u32 8388608, %v49_v8 }
  0x2d   :  { %p243_p5 = por %p242_p4, %p241_p3 }
  0x2e   :  { %v52_v7 = vadd.s32 1, %v171_v6  ;;  %v90_v31 = vshll.u32 %v50_v11, 8 }
  0x2f   :  { %p244_p6 = pnand %p243_p5, %p237_p2 }
  0x30   :  { %vm53_vm0 = vcmp.gt.s32.totalorder %v52_v7, 0 }
  0x31   :  { %v54_v9 = vsel %vm53_vm0, %v52_v7, 0 }
  0x32   :  { %v56_v10 = vand.u32 31, %v54_v9  ;;  %v55_v12 = vshrl.u32 %v54_v9, 5 }
  0x34   :  { %v57_v13 = vsub.s32 32, %v56_v10  ;;  %v59_v15 = vshll.u32 %v266_v14, %v56_v10  ;;  %v62_v17 = vshll.u32 %v267_v16, %v56_v10  ;;  %v65_v19 = vshll.u32 %v268_v18, %v56_v10 }
  0x35   :  { %v68_v21 = vshll.u32 %v269_v20, %v56_v10  ;;  %v71_v23 = vshll.u32 %v270_v22, %v56_v10  ;;  %vm74_vm1 = vcmp.lt.s32.totalorder %v55_v12, 1  ;;  %vm77_vm2 = vcmp.lt.s32.totalorder %v55_v12, 4 }
  0x36   :  { %v58_v24 = vshrl.u32 %v266_v14, %v57_v13  ;;  %v60_v25 = vshrl.u32 %v267_v16, %v57_v13  ;;  %v63_v26 = vshrl.u32 %v268_v18, %v57_v13  ;;  %v66_v27 = vshrl.u32 %v269_v20, %v57_v13 }
  0x37   :  { %v69_v28 = vshrl.u32 %v270_v22, %v57_v13  ;;  %v72_v30 = vshrl.u32 %v271_v29, %v57_v13  ;;  %vm75_vm3 = vcmp.lt.s32.totalorder %v55_v12, 2  ;;  %vm76_vm4 = vcmp.lt.s32.totalorder %v55_v12, 3 }
  0x38   :  { %v61_v32 = vor.u32 %v60_v25, %v59_v15  ;;  %v64_v33 = vor.u32 %v63_v26, %v62_v17  ;;  %v67_v34 = vor.u32 %v66_v27, %v65_v19 }
  0x39   :  { %v70_v35 = vor.u32 %v69_v28, %v68_v21  ;;  %v73_v36 = vor.u32 %v72_v30, %v71_v23 }
  0x3a   :  { %v78_v37 = vsel %vm74_vm1, %v58_v24, %v61_v32  ;;  %v79_v38 = vsel %vm77_vm2, %v67_v34, 2102212464  ;;  %v82_v39 = vsel %vm74_vm1, %v61_v32, %v64_v33  ;;  %v86_v40 = vsel %vm74_vm1, %v64_v33, %v67_v34  ;;  %v147_v32 = vld [vmem:[%s359_s2] sm:$0xf] }
  0x3b   :  { %v80_v41 = vsel %vm76_vm4, %v64_v33, %v79_v38  ;;  %v83_v42 = vsel %vm77_vm2, %v70_v35, 920167782  ;;  %v87_v43 = vsel %vm77_vm2, %v73_v36, 1326507024  ;;  %v150_v33 = vlaneseq }
  0x3c   :  { %v84_v44 = vsel %vm76_vm4, %v67_v34, %v83_v42  ;;  %v88_v45 = vsel %vm76_vm4, %v70_v35, %v87_v43  ;;  %v81_v46 = vsel %vm75_vm3, %v78_v37, %v80_v41 }
  0x3d   :  { %v85_v47 = vsel %vm75_vm3, %v82_v39, %v84_v44  ;;  %v89_v48 = vsel %vm75_vm3, %v86_v40, %v88_v45  ;;  %v97_v53 = vmul.u32 %v90_v31, %v81_v46  ;;  %vm152_vm13 = vcmp.lt.s32.totalorder %v150_v33, 512 }
  0x3e   :  { %v326_v49 = vmul.u32.u64.low %v90_v31, %v89_v48  ;;  %v327_v50 = vmul.u32.u64.high %v90_v31, %v89_v48, %v326_v49  ;;  %v329_v51 = vmul.u32.u64.low %v90_v31, %v85_v47  ;;  %v330_v52 = vmul.u32.u64.high %v90_v31, %v85_v47, %v329_v51 }
  0x40   :  { %vm99_vm5 = vc.u32 %v327_v50, %v329_v51  ;;  %v100_v54 = vadd.s32 1, %v330_v52  ;;  %v98_v3 = vadd.s32 %v329_v51, %v327_v50 }
  0x42   :  { %v101_v55 = vsel %vm99_vm5, %v100_v54, %v330_v52 }
  0x43   :  { %v102_v56 = vadd.s32 %v101_v55, %v97_v53 }
  0x45   :  { %v103_v57 = vadd.s32 536870912, %v102_v56 }
  0x47   :  { %v104_v58 = vshrl.u32 %v103_v57, 30 }
  0x49   :  { %v105_v59 = vshll.u32 %v104_v58, 30  ;;  %v128_v16 = vsub.s32 4, %v104_v58 }
  0x4b   :  { %v106_v60 = vsub.s32 %v102_v56, %v105_v59  ;;  %v129_v19 = vsel %vm44_vm7, %v128_v16, %v104_v58 }
  0x4c   :  { %v131_v22 = vsel %vm43_vm8, 0, %v129_v19 }
  0x4d   :  { %v108_v61 = vsub.s32 0, %v106_v60  ;;  %v135_v23 = vadd.s32 3, %v131_v22 }
  0x4f   :  { %v172_v62 = vmin.u32 %v108_v61, %v106_v60  ;;  %v136_v24 = vand.u32 3, %v135_v23 }
  0x51   :  { %v110_v63 = vclz %v172_v62  ;;  %vm141_vm9 = vcmp.eq.s32.totalorder %v136_v24, 2  ;;  %vm138_vm10 = vcmp.eq.s32.totalorder %v136_v24, 0  ;;  %vm137_vm11 = vcmp.lt.s32.totalorder %v136_v24, 2 }
  0x53   :  { %v173_v1 = vadd.s32 4294967294, %v110_v63 }
  0x55   :  { %vm174_vm6 = vcmp.lt.s32.totalorder %v173_v1, 0 }
  0x56   :  { %v113_v4 = vsel %vm174_vm6, 0, %v173_v1 }
  0x57   :  { %v114_v6 = vsub.s32 32, %v113_v4  ;;  %v115_v7 = vshll.u32 %v106_v60, %v113_v4  ;;  %v118_v8 = vsub.s32 4294967266, %v113_v4 }
  0x59   :  { %v116_v9 = vshrl.u32 %v98_v3, %v114_v6  ;;  %v119_v10 = vadd.s32 127, %v118_v8 }
  0x5b   :  { %v117_v11 = vor.u32 %v116_v9, %v115_v7  ;;  %v120_v12 = vshll.u32 %v119_v10, 23 }
  0x5d   :  { %v121_v13 = vor.u32 4788187, %v120_v12  ;;  %v124_v14 = vcvt.s32.f32 %v117_v11 }
  0x5f   :  { %v122_v15 = vand.u32 2147483647, %v121_v13 }
  0x61   :  { %v125_v17 = vmul.f32 %v124_v14, %v122_v15 }
  0x63   :  { %v126_v18 = vxor.u32 2147483648, %v125_v17 }
  0x65   :  { %v127_v20 = vsel %vm44_vm7, %v126_v18, %v125_v17 }
  0x66   :  { %v130_v21 = vsel %vm43_vm8, %v320_v2, %v127_v20 }
  0x67   :  { %188 = vcosq.f32 %v130_v21 }
  0x68   :  { %190 = vsinq.f32 %v130_v21 }
  0x71   :  { %v189_v25 = vpop.eup %188 }
  0x72   :  { %v191_v26 = vpop.eup %190  ;;  %v142_v27 = vxor.u32 2147483648, %v189_v25 }
  0x73   :  { %v139_v28 = vxor.u32 2147483648, %v191_v26 }
  0x74   :  { %v143_v5 = vsel %vm141_vm9, %v142_v27, %v191_v26 }
  0x75   :  { %v140_v29 = vsel %vm138_vm10, %v189_v25, %v139_v28 }
  0x76   :  { %v144_v30 = vsel %vm137_vm11, %v140_v29, %v143_v5 }
  0x77   :  { %v145_v31 = vsel %vm134_vm12, nan, %v144_v30 }
  0x78   :  { %v146_v34 = vmul.f32 %v145_v31, %v145_v31 }
  0x7a   :  { %v148_v35 = vmul.f32 %v147_v32, %v146_v34 }
  0x7c   :  { %v149_v36 = vadd.f32 %v148_v35, %v317_v0 }
  0x7e   :  { %154 = vst.msk [vmem:[#allocation7] sm:$0xf] %vm152_vm13, %v149_v36 }
  0x7f   :  { %247 = shalt.err (!%p244_p6)
}
  0x80   :  { %s248_s2 = scalar_lea.hbm %s360_s3, 64 }
  0x81   :  { %p249_p7 = scmp.ne.s32.totalorder %s360_s3, %s248_s2  ;;  %p252_p8 = scmp.lt.u32.totalorder %s248_s2, %s360_s3 }
  0x83   :  { %p254_p9 = pnand %p252_p8, %p249_p7 }
  0x85   :  { %257 = shalt.err (!%p254_p9)
}
  0x86   :  { %164 = dma.vmem_to_hbm [thread:$0]  %s162_s10, 64, %s360_s3, [#allocation4]  }
  0x87   :  { %262 = dma.done.wait [#allocation4], 64  }
  0x88   :  { %263 = vsyncadd [#allocation4], 4294967232 }
  0x89   :  { %168 = vsyncpa [#allocation3], 1 }
  0x8a   :  { %169 = vsyncpa [#allocation6], 1 }
  0x8b   :  { %170 = vsyncpa [#allocation4], 1 }

</bundles_post_ra>
